<compile_context>
chip_gen: v5e
topology: v5e:2x2
jax: 0.10.0
libtpu: 0.0.40
codegen_flags: <defaults>
</compile_context>

<pallas_src>
import functools

import jax
import jax.numpy as jnp
from jax.experimental import pallas as pl
from jax.experimental.pallas import tpu as pltpu


# Below this channel count the 1x1-conv matmul is MXU-degenerate; unroll on VPU.
_UNROLL_NF_MAX = 16


def _clfc_kernel(training, ft_ref, fr_ref,
                 wz_ref, bz_ref,
                 wg_ref, bg_ref,
                 wp_ref, bp_ref,
                 *out_refs):
    """One (sample, spatial-slab) tile.

    ft_ref, fr_ref, out_refs[0] : (1, nf, thw)   -- H*W on the lane axis
    out_refs[1:] (training)     : (1, nh, thw) z and g intermediates
    wz_ref, wg_ref              : (nh, nf)
    bz_ref, bg_ref, wp_ref      : (nh, 1)
    bp_ref                      : (1, 1)
    """
    out_ref = out_refs[0]
    ft = ft_ref[0].astype(jnp.float32)      # (nf, thw)
    fr = fr_ref[0].astype(jnp.float32)      # (nf, thw)
    nh, nf = wz_ref.shape

    # Load + cast parameters exactly once (tiny; stays in vregs).
    wz = wz_ref[...].astype(jnp.float32)
    wg = wg_ref[...].astype(jnp.float32)
    bz = bz_ref[...].astype(jnp.float32)
    bg = bg_ref[...].astype(jnp.float32)
    wp = wp_ref[...].astype(jnp.float32)
    bp = bp_ref[...].astype(jnp.float32)

    def channel_mix(x, w, b):
        # (nh, nf) "conv 1x1" applied to x: (nf, thw) -> (nh, thw)
        if nf <= _UNROLL_NF_MAX:
            # Tiny channel count: MXU would be nearly empty; unrolled VPU FMAs.
            acc = w[:, 0:1] * x[0:1, :] + b
            for ci in range(1, nf):
                acc = acc + w[:, ci:ci + 1] * x[ci:ci + 1, :]
            return acc
        return jnp.dot(w, x, preferred_element_type=jnp.float32) + b

    z = channel_mix(ft, wz, bz)             # zeta(ft)  : (nh, thw)
    g = channel_mix(fr, wg, bg)             # g(fr)     : (nh, thw)

    t = jnp.maximum(-z * g, 0.0)            # relu(-z*g)

    # phi: nh -> 1 projection.  Width-1 matmul would waste the MXU; do a VPU
    # multiply + sublane-sum instead (f32 throughout for v5e parity).
    p = jnp.sum(t * wp, axis=0, keepdims=True) + bp      # (1, thw)
    a = jax.nn.sigmoid(p)                                 # exp on the EUP

    # ft * a, broadcast over channels (sublanes); lane-dense store.
    out_ref[0] = (ft * a).astype(out_ref.dtype)

    if training:
        z_ref, g_ref = out_refs[1], out_refs[2]
        z_ref[0] = z.astype(z_ref.dtype)
        g_ref[0] = g.astype(g_ref.dtype)


@functools.partial(jax.jit, static_argnames=("thw", "training"))
def clfc_forward(ft, fr, params, *, thw=2048, training=False):
    """ft, fr: NCHW float32 arrays of shape (N, nf, H, W).

    training=False -> ft * a                     (eval-mode forward)
    training=True  -> (ft * a, (z_ft, g_fr))     (training-mode forward)
    """
    assert thw % 128 == 0, "spatial tile must be a multiple of 128 lanes"
    wz, bz, wg, bg, wp, bp = params
    N, nf, H, W = ft.shape
    nh = nf // 2
    HW = H * W

    # Free reshape: NCHW is contiguous over (H, W), no transpose needed.
    ft3 = ft.reshape(N, nf, HW)
    fr3 = fr.reshape(N, nf, HW)

    if HW <= thw:
        thw_eff = HW                    # one lane-dense block covers all of H*W
        n_hw = 1
        hw_pad = HW
    else:
        thw_eff = thw
        n_hw = pl.cdiv(HW, thw_eff)
        hw_pad = n_hw * thw_eff
        if hw_pad != HW:                # ragged last tile -> zero pad, slice later
            pad = hw_pad - HW
            ft3 = jnp.pad(ft3, ((0, 0), (0, 0), (0, pad)))
            fr3 = jnp.pad(fr3, ((0, 0), (0, 0), (0, pad)))

    io_spec = pl.BlockSpec((1, nf, thw_eff), lambda n, j: (n, 0, j))
    zg_spec = pl.BlockSpec((1, nh, thw_eff), lambda n, j: (n, 0, j))
    const = lambda shape: pl.BlockSpec(shape, lambda n, j: (0, 0))

    if training:
        out_shape = (jax.ShapeDtypeStruct((N, nf, hw_pad), ft.dtype),
                     jax.ShapeDtypeStruct((N, nh, hw_pad), ft.dtype),
                     jax.ShapeDtypeStruct((N, nh, hw_pad), ft.dtype))
        out_specs = (io_spec, zg_spec, zg_spec)
    else:
        out_shape = jax.ShapeDtypeStruct((N, nf, hw_pad), ft.dtype)
        out_specs = io_spec

    result = pl.pallas_call(
        functools.partial(_clfc_kernel, training),
        out_shape=out_shape,
        grid_spec=pltpu.PrefetchScalarGridSpec(
            num_scalar_prefetch=0,
            grid=(N, n_hw),
            in_specs=[
                io_spec,                  # ft slab
                io_spec,                  # fr slab
                const((nh, nf)),          # W_zeta
                const((nh, 1)),           # b_zeta
                const((nh, nf)),          # W_g
                const((nh, 1)),           # b_g
                const((nh, 1)),           # W_phi (stored as a column)
                const((1, 1)),            # b_phi
            ],
            out_specs=out_specs,
        ),
        compiler_params=pltpu.CompilerParams(
            dimension_semantics=("parallel", "parallel"),
            vmem_limit_bytes=48 * 1024 * 1024),
    )(ft3, fr3, wz, bz, wg, bg, wp, bp)

    if training:
        out3, z3, g3 = result
        out = out3[:, :, :HW].reshape(N, nf, H, W)
        z = z3[:, :, :HW].reshape(N, nh, H, W)
        g = g3[:, :, :HW].reshape(N, nh, H, W)
        return out, (z, g)
    out = result[:, :, :HW].reshape(N, nf, H, W)
    return out


def init_params(key, nf):
    """Deterministic synthetic parameters matching CLFC(nf).__init__ shapes.

    PyTorch Conv2d(in, out, 1) weight is (out, in, 1, 1); we store the
    channel-mix form (out, in).  Biases stored as (out, 1) columns so they
    broadcast over the lane (spatial) axis inside the kernel.
    """
    nh = nf // 2
    k = jax.random.split(key, 6)
    scale_in = 1.0 / jnp.sqrt(nf)
    scale_h = 1.0 / jnp.sqrt(nh)
    wz = jax.random.uniform(k[0], (nh, nf), jnp.float32, -scale_in, scale_in)
    bz = jax.random.uniform(k[1], (nh, 1), jnp.float32, -scale_in, scale_in)
    wg = jax.random.uniform(k[2], (nh, nf), jnp.float32, -scale_in, scale_in)
    bg = jax.random.uniform(k[3], (nh, 1), jnp.float32, -scale_in, scale_in)
    wp = jax.random.uniform(k[4], (nh, 1), jnp.float32, -scale_h, scale_h)   # phi weight as column
    bp = jax.random.uniform(k[5], (1, 1), jnp.float32, -scale_h, scale_h)
    return (wz, bz, wg, bg, wp, bp)


def clfc_reference(ft, fr, params):
    """Pure-JAX reference (mirrors the PyTorch forward), NCHW native.

    Returns (out, (z_ft, g_fr)) like training mode; eval-mode output is out.
    """
    wz, bz, wg, bg, wp, bp = params
    z = jnp.einsum('oc,nchw->nohw', wz, ft) + bz.reshape(1, -1, 1, 1)
    g = jnp.einsum('oc,nchw->nohw', wg, fr) + bg.reshape(1, -1, 1, 1)
    t = jnp.maximum(-z * g, 0.0)
    p = jnp.einsum('co,nchw->nohw', wp, t) + bp.reshape(1, 1, 1, 1)
    a = jax.nn.sigmoid(p)
    return ft * a, (z, g)


if __name__ == "__main__":
    key = jax.random.PRNGKey(0)
    k_ft, k_fr, k_p = jax.random.split(key, 3)

    N, nf, H, W = 2, 4, 16, 16        # small shapes; H*W = 256 (one lane-dense slab)
    ft = jax.random.normal(k_ft, (N, nf, H, W), jnp.float32)
    fr = jax.random.normal(k_fr, (N, nf, H, W), jnp.float32)
    params = init_params(k_p, nf)

    ref_out, (ref_z, ref_g) = clfc_reference(ft, fr, params)

    # Eval-mode forward (ft * a).
    out = clfc_forward(ft, fr, params)
    out = jax.block_until_ready(out)
    assert out.shape == (N, nf, H, W)
    assert jnp.allclose(out, ref_out, atol=1e-5, rtol=1e-5), "eval mismatch vs reference"

    # Training-mode forward (ft * a, (z_ft, g_fr)).
    out_t, (z_t, g_t) = clfc_forward(ft, fr, params, training=True)
    out_t = jax.block_until_ready(out_t)
    assert jnp.allclose(out_t, ref_out, atol=1e-5, rtol=1e-5), "train out mismatch"
    assert jnp.allclose(z_t, ref_z, atol=1e-5, rtol=1e-5), "z_ft mismatch"
    assert jnp.allclose(g_t, ref_g, atol=1e-5, rtol=1e-5), "g_fr mismatch"

    print("KERNEL_OK")
</pallas_src>

<mosaic_0001>
module attributes {stable_mosaic.version = 11 : i64} {
  func.func @_clfc_kernel(%arg0: i32, %arg1: i32, %arg2: memref<1x4x256xf32, #tpu.memory_space<vmem>>, %arg3: memref<1x4x256xf32, #tpu.memory_space<vmem>>, %arg4: memref<2x4xf32, #tpu.memory_space<vmem>>, %arg5: memref<2x1xf32, #tpu.memory_space<vmem>>, %arg6: memref<2x4xf32, #tpu.memory_space<vmem>>, %arg7: memref<2x1xf32, #tpu.memory_space<vmem>>, %arg8: memref<2x1xf32, #tpu.memory_space<vmem>>, %arg9: memref<1x1xf32, #tpu.memory_space<vmem>>, %arg10: memref<1x4x256xf32, #tpu.memory_space<vmem>>) attributes {dimension_semantics = [#tpu.dimension_semantics<parallel>, #tpu.dimension_semantics<parallel>], iteration_bounds = array<i64: 2, 1>, scalar_prefetch = 0 : i64, scratch_operands = 0 : i64, tpu.core_type = #tpu.core_type<tc>, window_params = [{transform_indices = @transform_0, window_bounds = array<i64: 1, 4, 256>}, {transform_indices = @transform_1, window_bounds = array<i64: 1, 4, 256>}, {pipeline_mode = #tpu.pipeline_mode<synchronous>, transform_indices = @transform_2, window_bounds = array<i64: 2, 4>}, {pipeline_mode = #tpu.pipeline_mode<synchronous>, transform_indices = @transform_3, window_bounds = array<i64: 2, 1>}, {pipeline_mode = #tpu.pipeline_mode<synchronous>, transform_indices = @transform_4, window_bounds = array<i64: 2, 4>}, {pipeline_mode = #tpu.pipeline_mode<synchronous>, transform_indices = @transform_5, window_bounds = array<i64: 2, 1>}, {pipeline_mode = #tpu.pipeline_mode<synchronous>, transform_indices = @transform_6, window_bounds = array<i64: 2, 1>}, {pipeline_mode = #tpu.pipeline_mode<synchronous>, transform_indices = @transform_7, window_bounds = array<i64: 1, 1>}, {transform_indices = @transform_8, window_bounds = array<i64: 1, 4, 256>}]} {
    %c0 = arith.constant 0 : index
    %c0_0 = arith.constant 0 : index
    %c0_1 = arith.constant 0 : index
    %0 = vector.load %arg2[%c0, %c0_0, %c0_1] : memref<1x4x256xf32, #tpu.memory_space<vmem>>, vector<1x4x256xf32>
    %1 = vector.shape_cast %0 : vector<1x4x256xf32> to vector<4x256xf32>
    %c0_2 = arith.constant 0 : index
    %c0_3 = arith.constant 0 : index
    %c0_4 = arith.constant 0 : index
    %2 = vector.load %arg3[%c0_2, %c0_3, %c0_4] : memref<1x4x256xf32, #tpu.memory_space<vmem>>, vector<1x4x256xf32>
    %3 = vector.shape_cast %2 : vector<1x4x256xf32> to vector<4x256xf32>
    %c0_5 = arith.constant 0 : index
    %c0_6 = arith.constant 0 : index
    %4 = vector.load %arg4[%c0_5, %c0_6] : memref<2x4xf32, #tpu.memory_space<vmem>>, vector<2x4xf32>
    %c0_7 = arith.constant 0 : index
    %c0_8 = arith.constant 0 : index
    %5 = vector.load %arg6[%c0_7, %c0_8] : memref<2x4xf32, #tpu.memory_space<vmem>>, vector<2x4xf32>
    %c0_9 = arith.constant 0 : index
    %c0_10 = arith.constant 0 : index
    %6 = vector.load %arg5[%c0_9, %c0_10] : memref<2x1xf32, #tpu.memory_space<vmem>>, vector<2x1xf32>
    %c0_11 = arith.constant 0 : index
    %c0_12 = arith.constant 0 : index
    %7 = vector.load %arg7[%c0_11, %c0_12] : memref<2x1xf32, #tpu.memory_space<vmem>>, vector<2x1xf32>
    %c0_13 = arith.constant 0 : index
    %c0_14 = arith.constant 0 : index
    %8 = vector.load %arg8[%c0_13, %c0_14] : memref<2x1xf32, #tpu.memory_space<vmem>>, vector<2x1xf32>
    %c0_15 = arith.constant 0 : index
    %c0_16 = arith.constant 0 : index
    %9 = vector.load %arg9[%c0_15, %c0_16] : memref<1x1xf32, #tpu.memory_space<vmem>>, vector<1x1xf32>
    %10 = vector.extract_strided_slice %4 {offsets = [0, 0], sizes = [2, 1], strides = [1, 1]} : vector<2x4xf32> to vector<2x1xf32>
    %11 = vector.extract_strided_slice %1 {offsets = [0, 0], sizes = [1, 256], strides = [1, 1]} : vector<4x256xf32> to vector<1x256xf32>
    %12 = vector.broadcast %10 : vector<2x1xf32> to vector<2x256xf32>
    %13 = vector.broadcast %11 : vector<1x256xf32> to vector<2x256xf32>
    %14 = arith.mulf %12, %13 : vector<2x256xf32>
    %15 = vector.broadcast %6 : vector<2x1xf32> to vector<2x256xf32>
    %16 = arith.addf %14, %15 : vector<2x256xf32>
    %17 = vector.extract_strided_slice %4 {offsets = [0, 1], sizes = [2, 1], strides = [1, 1]} : vector<2x4xf32> to vector<2x1xf32>
    %18 = vector.extract_strided_slice %1 {offsets = [1, 0], sizes = [1, 256], strides = [1, 1]} : vector<4x256xf32> to vector<1x256xf32>
    %19 = vector.broadcast %17 : vector<2x1xf32> to vector<2x256xf32>
    %20 = vector.broadcast %18 : vector<1x256xf32> to vector<2x256xf32>
    %21 = arith.mulf %19, %20 : vector<2x256xf32>
    %22 = arith.addf %16, %21 : vector<2x256xf32>
    %23 = vector.extract_strided_slice %4 {offsets = [0, 2], sizes = [2, 1], strides = [1, 1]} : vector<2x4xf32> to vector<2x1xf32>
    %24 = vector.extract_strided_slice %1 {offsets = [2, 0], sizes = [1, 256], strides = [1, 1]} : vector<4x256xf32> to vector<1x256xf32>
    %25 = vector.broadcast %23 : vector<2x1xf32> to vector<2x256xf32>
    %26 = vector.broadcast %24 : vector<1x256xf32> to vector<2x256xf32>
    %27 = arith.mulf %25, %26 : vector<2x256xf32>
    %28 = arith.addf %22, %27 : vector<2x256xf32>
    %29 = vector.extract_strided_slice %4 {offsets = [0, 3], sizes = [2, 1], strides = [1, 1]} : vector<2x4xf32> to vector<2x1xf32>
    %30 = vector.extract_strided_slice %1 {offsets = [3, 0], sizes = [1, 256], strides = [1, 1]} : vector<4x256xf32> to vector<1x256xf32>
    %31 = vector.broadcast %29 : vector<2x1xf32> to vector<2x256xf32>
    %32 = vector.broadcast %30 : vector<1x256xf32> to vector<2x256xf32>
    %33 = arith.mulf %31, %32 : vector<2x256xf32>
    %34 = arith.addf %28, %33 : vector<2x256xf32>
    %35 = vector.extract_strided_slice %5 {offsets = [0, 0], sizes = [2, 1], strides = [1, 1]} : vector<2x4xf32> to vector<2x1xf32>
    %36 = vector.extract_strided_slice %3 {offsets = [0, 0], sizes = [1, 256], strides = [1, 1]} : vector<4x256xf32> to vector<1x256xf32>
    %37 = vector.broadcast %35 : vector<2x1xf32> to vector<2x256xf32>
    %38 = vector.broadcast %36 : vector<1x256xf32> to vector<2x256xf32>
    %39 = arith.mulf %37, %38 : vector<2x256xf32>
    %40 = vector.broadcast %7 : vector<2x1xf32> to vector<2x256xf32>
    %41 = arith.addf %39, %40 : vector<2x256xf32>
    %42 = vector.extract_strided_slice %5 {offsets = [0, 1], sizes = [2, 1], strides = [1, 1]} : vector<2x4xf32> to vector<2x1xf32>
    %43 = vector.extract_strided_slice %3 {offsets = [1, 0], sizes = [1, 256], strides = [1, 1]} : vector<4x256xf32> to vector<1x256xf32>
    %44 = vector.broadcast %42 : vector<2x1xf32> to vector<2x256xf32>
    %45 = vector.broadcast %43 : vector<1x256xf32> to vector<2x256xf32>
    %46 = arith.mulf %44, %45 : vector<2x256xf32>
    %47 = arith.addf %41, %46 : vector<2x256xf32>
    %48 = vector.extract_strided_slice %5 {offsets = [0, 2], sizes = [2, 1], strides = [1, 1]} : vector<2x4xf32> to vector<2x1xf32>
    %49 = vector.extract_strided_slice %3 {offsets = [2, 0], sizes = [1, 256], strides = [1, 1]} : vector<4x256xf32> to vector<1x256xf32>
    %50 = vector.broadcast %48 : vector<2x1xf32> to vector<2x256xf32>
    %51 = vector.broadcast %49 : vector<1x256xf32> to vector<2x256xf32>
    %52 = arith.mulf %50, %51 : vector<2x256xf32>
    %53 = arith.addf %47, %52 : vector<2x256xf32>
    %54 = vector.extract_strided_slice %5 {offsets = [0, 3], sizes = [2, 1], strides = [1, 1]} : vector<2x4xf32> to vector<2x1xf32>
    %55 = vector.extract_strided_slice %3 {offsets = [3, 0], sizes = [1, 256], strides = [1, 1]} : vector<4x256xf32> to vector<1x256xf32>
    %56 = vector.broadcast %54 : vector<2x1xf32> to vector<2x256xf32>
    %57 = vector.broadcast %55 : vector<1x256xf32> to vector<2x256xf32>
    %58 = arith.mulf %56, %57 : vector<2x256xf32>
    %59 = arith.addf %53, %58 : vector<2x256xf32>
    %cst = arith.constant 0.000000e+00 : f32
    %60 = vector.broadcast %cst : f32 to vector<2x256xf32>
    %61 = arith.subf %60, %34 : vector<2x256xf32>
    %62 = arith.mulf %61, %59 : vector<2x256xf32>
    %cst_17 = arith.constant 0.000000e+00 : f32
    %63 = vector.broadcast %cst_17 : f32 to vector<2x256xf32>
    %64 = arith.maximumf %62, %63 : vector<2x256xf32>
    %65 = vector.broadcast %8 : vector<2x1xf32> to vector<2x256xf32>
    %66 = arith.mulf %64, %65 : vector<2x256xf32>
    %cst_18 = arith.constant dense<0.000000e+00> : vector<256xf32>
    %67 = vector.multi_reduction <add>, %66, %cst_18 [0] : vector<2x256xf32> to vector<256xf32>
    %68 = vector.shape_cast %67 : vector<256xf32> to vector<1x256xf32>
    %69 = vector.broadcast %9 : vector<1x1xf32> to vector<1x256xf32>
    %70 = arith.addf %68, %69 : vector<1x256xf32>
    %71 = arith.negf %70 : vector<1x256xf32>
    %72 = math.exp %71 : vector<1x256xf32>
    %cst_19 = arith.constant 1.000000e+00 : f32
    %73 = vector.broadcast %cst_19 : f32 to vector<1x256xf32>
    %74 = arith.addf %73, %72 : vector<1x256xf32>
    %75 = arith.divf %73, %74 : vector<1x256xf32>
    %76 = vector.broadcast %75 : vector<1x256xf32> to vector<4x256xf32>
    %77 = arith.mulf %1, %76 : vector<4x256xf32>
    %c0_20 = arith.constant 0 : index
    %c0_21 = arith.constant 0 : index
    %c0_22 = arith.constant 0 : index
    %78 = vector.load %arg10[%c0_20, %c0_21, %c0_22] : memref<1x4x256xf32, #tpu.memory_space<vmem>>, vector<1x4x256xf32>
    %79 = vector.shape_cast %78 : vector<1x4x256xf32> to vector<4x256xf32>
    %80 = vector.shape_cast %77 : vector<4x256xf32> to vector<1x4x256xf32>
    tpu.vector_store %arg10[%c0_20, %c0_21, %c0_22], %80 {strides = array<i32>} : memref<1x4x256xf32, #tpu.memory_space<vmem>>, vector<1x4x256xf32>,
    return
  }
  func.func @transform_0(%arg0: i32, %arg1: i32) -> (i32, i32, i32) {
    %c0_i32 = arith.constant 0 : i32
    %c0_i32_0 = arith.constant 0 : i32
    return %arg0, %c0_i32, %arg1 : i32, i32, i32
  }
  func.func @transform_1(%arg0: i32, %arg1: i32) -> (i32, i32, i32) {
    %c0_i32 = arith.constant 0 : i32
    %c0_i32_0 = arith.constant 0 : i32
    return %arg0, %c0_i32, %arg1 : i32, i32, i32
  }
  func.func @transform_2(%arg0: i32, %arg1: i32) -> (i32, i32) {
    %c0_i32 = arith.constant 0 : i32
    %c0_i32_0 = arith.constant 0 : i32
    %c0_i32_1 = arith.constant 0 : i32
    return %c0_i32, %c0_i32_0 : i32, i32
  }
  func.func @transform_3(%arg0: i32, %arg1: i32) -> (i32, i32) {
    %c0_i32 = arith.constant 0 : i32
    %c0_i32_0 = arith.constant 0 : i32
    %c0_i32_1 = arith.constant 0 : i32
    return %c0_i32, %c0_i32_0 : i32, i32
  }
  func.func @transform_4(%arg0: i32, %arg1: i32) -> (i32, i32) {
    %c0_i32 = arith.constant 0 : i32
    %c0_i32_0 = arith.constant 0 : i32
    %c0_i32_1 = arith.constant 0 : i32
    return %c0_i32, %c0_i32_0 : i32, i32
  }
  func.func @transform_5(%arg0: i32, %arg1: i32) -> (i32, i32) {
    %c0_i32 = arith.constant 0 : i32
    %c0_i32_0 = arith.constant 0 : i32
    %c0_i32_1 = arith.constant 0 : i32
    return %c0_i32, %c0_i32_0 : i32, i32
  }
  func.func @transform_6(%arg0: i32, %arg1: i32) -> (i32, i32) {
    %c0_i32 = arith.constant 0 : i32
    %c0_i32_0 = arith.constant 0 : i32
    %c0_i32_1 = arith.constant 0 : i32
    return %c0_i32, %c0_i32_0 : i32, i32
  }
  func.func @transform_7(%arg0: i32, %arg1: i32) -> (i32, i32) {
    %c0_i32 = arith.constant 0 : i32
    %c0_i32_0 = arith.constant 0 : i32
    %c0_i32_1 = arith.constant 0 : i32
    return %c0_i32, %c0_i32_0 : i32, i32
  }
  func.func @transform_8(%arg0: i32, %arg1: i32) -> (i32, i32, i32) {
    %c0_i32 = arith.constant 0 : i32
    %c0_i32_0 = arith.constant 0 : i32
    return %arg0, %c0_i32, %arg1 : i32, i32, i32
  }
}

</mosaic_0001>

<bundles_post_ra>
// kernel: clfc_forward.1
= control target key start
LH: loop header
LB: loop body
LE: loop exit
PB: predicated region body
PF: predicated region fallthrough
CT: control target
= control target key end

     0   :  { %s844_s29 = smov 0   ;;  %s846_s30 = smov 0   ;;  %s915_s0 = inlined_call_operand.vmem [shape: f32[2,4,256], index: 0, kind: input, shape index: {}]   ;;  %s916_s1 = inlined_call_operand.vmem [shape: f32[2,4,256], index: 1, kind: input, shape index: {}]   ;;  %s917_s2 = inlined_call_operand.vmem [shape: f32[2,4], index: 2, kind: input, shape index: {}]   ;;  %s918_s3 = inlined_call_operand.vmem [shape: f32[2,1], index: 3, kind: input, shape index: {}]   ;;  %s919_s4 = inlined_call_operand.vmem [shape: f32[2,4], index: 4, kind: input, shape index: {}]   ;;  %s920_s5 = inlined_call_operand.vmem [shape: f32[2,1], index: 5, kind: input, shape index: {}]   ;;  %s921_s6 = inlined_call_operand.vmem [shape: f32[2,1], index: 6, kind: input, shape index: {}]   ;;  %s922_s7 = inlined_call_operand.<no memory space> [shape: f32[1,1], index: 7, kind: input, shape index: {}]   ;;  %s923_s8 = inlined_call_operand.vmem [shape: f32[2,4,256], index: 8, kind: output, shape index: {}]  }
   0x1   :  { %v13_v0 = vstv %s922_s7  ;;  %s848_s9 = smov 0  }
   0x2   :  { %14 = vst [vmem:[#allocation2] sm:$0x1] %v13_v0 }
   0x3 LB: > { %s32_s7 = sadd.s32 1, %s786_s30  ;;  %p708_p0 = scmp.ge.s32.totalorder %s790_s9, 1  ;;  %s790_s9 = sphi %s848_s9, %s20_s9   ;;  %s786_s30 = sphi %s846_s30, %s925_s30   ;;  %s782_s29 = sphi %s844_s29, %s924_s29  }
   0x4   : > { %p34_p1 = scmp.ge.s32.totalorder %s32_s7, 2  ;;  %p302_p2 = scmp.lt.s32.totalorder %s790_s9, 3 }
   0x6   : > { %s927_s7 = smov (%p34_p1, %s32_s7), 0  ;;  %p303_p3 = pnand %p708_p0, %p302_p2 }
   0x7   : > { %p354_p4 = scmp.lt.s32.totalorder (!%p303_p3), %s782_s29, 1 }
   0x8   : > { %306 = sbr.rel (%p303_p3) target bundleno = 216 (0xd8), region = 52 }
   0xd   : > { %v385_v1 = vld [vmem:[%s917_s2] sm:$0x3]  ;;  %v792_v2 = vmov 1   ;;  %v793_v3 = vmov 0   ;;  %v794_v4 = vmov 2   ;;  %v795_v8 = vmov 3  }
   0xe   : > { %751 = vset.pattern.permute.xlu1 %v792_v2  ;;  %750 = vset.pattern.permute.xlu0 %v793_v3  ;;  %v387_v5 = vld [vmem:[%s918_s3] sm:$0x3]  ;;  %s929_s29 = smov (!%p354_p4, %s782_s29), 1  ;;  %vm530_vm0 = vcmask 1041408   ;;  %vm594_vm8 = vcmask 1043456  }
   0xf   : > { %413 = vperm.xlu1 %751, %v385_v1   ;;  %393 = vperm.xlu0 %750, %v385_v1   ;;  %v386_v6 = vld [vmem:[%s919_s4] sm:$0x3]  ;;  %s881_s20 = sshll.u32 %s929_s29, 3 }
  0x10   : > { %753 = vset.pattern.permute.xlu2 %v794_v4  ;;  %v388_v7 = vld [vmem:[%s920_s5] sm:$0x3]  ;;  %s361_s23 = scalar_lea.vmem %s915_s0, %s881_s20  ;;  %s371_s26 = scalar_lea.vmem %s916_s1, %s881_s20 }
  0x11   : > { %427 = vperm.xlu2 %753, %v385_v1   ;;  %v390_v9 = vld [vmem:[#allocation2] sm:$0x1]  ;;  %s381_s29 = scalar_lea.vmem %s923_s8, %s881_s20 }
  0x12   : > { %v389_v10 = vld [vmem:[%s921_s6] sm:$0x3] }
  0x13   : > { %v887_v14 = vld [vmem:[%s361_s23] sm:$0xff] }
  0x14   : > { %v397_v15 = vperm.slane %v887_v14, 0  ;;  %v398_v16 = vperm.slane %v887_v14, 4  ;;  %v384_v17 = vld [vmem:[%s371_s26] sm:$0xff]  ;;  %v416_v21 = vperm.slane %v887_v14, 1  ;;  %v417_v22 = vperm.slane %v887_v14, 5 }
  0x15   : > { %v460_v24 = vperm.slane %v384_v17, 0  ;;  %v461_v25 = vperm.slane %v384_v17, 4  ;;  %v479_v29 = vperm.slane %v384_v17, 1  ;;  %v480_v30 = vperm.slane %v384_v17, 5 }
  0x16   : > { %v401_v18 = vperm.slane %v397_v15, 0  ;;  %v402_v19 = vperm.slane %v398_v16, 0  ;;  %v430_v31 = vperm.slane %v887_v14, 2  ;;  %v431_v32 = vperm.slane %v887_v14, 6 }
  0x17   : > { %752 = vset.pattern.permute.xlu1 %v793_v3  ;;  %407 = vperm.xlu0 %750, %v387_v5   ;;  %v444_v33 = vperm.slane %v887_v14, 3  ;;  %v445_v34 = vperm.slane %v887_v14, 7  ;;  %v420_v35 = vperm.slane %v416_v21, 1  ;;  %v421_v36 = vperm.slane %v417_v22, 1 }
  0x18   : > { %456 = vperm.xlu1 %752, %v386_v6   ;;  %v464_v37 = vperm.slane %v460_v24, 0  ;;  %v465_v38 = vperm.slane %v461_v25, 0  ;;  %v493_v39 = vperm.slane %v384_v17, 2  ;;  %v494_v40 = vperm.slane %v384_v17, 6 }
  0x19   : > { %754 = vset.pattern.permute.xlu2 %v793_v3  ;;  %v483_v43 = vperm.slane %v479_v29, 1  ;;  %v484_v44 = vperm.slane %v480_v30, 1  ;;  %v434_v45 = vperm.slane %v430_v31, 2  ;;  %v435_v46 = vperm.slane %v431_v32, 2 }
  0x1a   : > { %470 = vperm.xlu2 %754, %v388_v7   ;;  %v448_v47 = vperm.slane %v444_v33, 3  ;;  %v449_v48 = vperm.slane %v445_v34, 3  ;;  %v497_v55 = vperm.slane %v493_v39, 2  ;;  %v498_v56 = vperm.slane %v494_v40, 2 }
  0x1b   : > { %v507_v57 = vperm.slane %v384_v17, 3  ;;  %v508_v58 = vperm.slane %v384_v17, 7 }
  0x1f   : > { %755 = vset.pattern.permute.xlu0 %v792_v2 }
  0x20   : > { %756 = vset.pattern.permute.xlu1 %v795_v8  ;;  %476 = vperm.xlu0 %755, %v386_v6   ;;  %v511_v8 = vperm.slane %v507_v57, 3 }
  0x21   : > { %441 = vperm.xlu1 %756, %v385_v1  }
  0x22   : > { %757 = vset.pattern.permute.xlu2 %v794_v4 }
  0x23   : > { %490 = vperm.xlu2 %757, %v386_v6  }
  0x28   : > { %759 = vset.pattern.permute.xlu0 %v793_v3 }
  0x29   : > { %504 = vperm.xlu1 %756, %v386_v6   ;;  %547 = vperm.xlu0 %759, %v390_v9   ;;  %v512_v9 = vperm.slane %v508_v58, 3 }
  0x2b   : > { %758 = vset.pattern.permute.xlu2 %v793_v3 }
  0x2c   : > { %525 = vperm.xlu2 %758, %v389_v10  }
  0x6b   : > { %v428_v11 = vpop.permute.xlu2 %427 }
  0x6c   : > { %v436_v0 = vmul.f32 %v434_v45, %v428_v11  ;;  %v437_v1 = vmul.f32 %v435_v46, %v428_v11 }
  0x74   : > { %v471_v26 = vpop.permute.xlu2 %470 }
  0x7d   : > { %v491_v63 = vpop.permute.xlu2 %490 }
  0x7e   : > { %v499_v6 = vmul.f32 %v497_v55, %v491_v63  ;;  %v500_v7 = vmul.f32 %v498_v56, %v491_v63 }
  0x81   : > { %v414_v12 = vpop.permute.xlu1 %413  ;;  %v394_v13 = vpop.permute.xlu0 %393 }
  0x82   : > { %v403_v27 = vmul.f32 %v401_v18, %v394_v13  ;;  %v404_v28 = vmul.f32 %v402_v19, %v394_v13  ;;  %v422_v49 = vmul.f32 %v420_v35, %v414_v12  ;;  %v423_v50 = vmul.f32 %v421_v36, %v414_v12 }
  0x89   : > { %v408_v20 = vpop.permute.xlu0 %407 }
  0x8a   : > { %v457_v23 = vpop.permute.xlu1 %456  ;;  %v410_v41 = vadd.f32 %v408_v20, %v403_v27  ;;  %v411_v42 = vadd.f32 %v408_v20, %v404_v28  ;;  %v526_v28 = vpop.permute.xlu2 %525 }
  0x8b   : > { %v466_v51 = vmul.f32 %v464_v37, %v457_v23  ;;  %v467_v52 = vmul.f32 %v465_v38, %v457_v23 }
  0x8c   : > { %v424_v59 = vadd.f32 %v422_v49, %v410_v41  ;;  %v425_v60 = vadd.f32 %v423_v50, %v411_v42 }
  0x8d   : > { %v473_v2 = vadd.f32 %v471_v26, %v466_v51  ;;  %v474_v3 = vadd.f32 %v471_v26, %v467_v52 }
  0x8e   : > { %v438_v13 = vadd.f32 %v436_v0, %v424_v59  ;;  %v439_v15 = vadd.f32 %v437_v1, %v425_v60 }
  0x92   : > { %v477_v53 = vpop.permute.xlu0 %476 }
  0x93   : > { %v442_v54 = vpop.permute.xlu1 %441  ;;  %v485_v61 = vmul.f32 %v483_v43, %v477_v53  ;;  %v486_v62 = vmul.f32 %v484_v44, %v477_v53 }
  0x94   : > { %v450_v4 = vmul.f32 %v448_v47, %v442_v54  ;;  %v451_v5 = vmul.f32 %v449_v48, %v442_v54 }
  0x95   : > { %v487_v10 = vadd.f32 %v485_v61, %v473_v2  ;;  %v488_v12 = vadd.f32 %v486_v62, %v474_v3 }
  0x96   : > { %v452_v16 = vadd.f32 %v450_v4, %v438_v13  ;;  %v453_v17 = vadd.f32 %v451_v5, %v439_v15 }
  0x97   : > { %v501_v19 = vadd.f32 %v499_v6, %v487_v10  ;;  %v502_v20 = vadd.f32 %v500_v7, %v488_v12 }
  0x98   : > { %v517_v11 = vsub.f32 0.0, %v452_v16  ;;  %v518_v23 = vsub.f32 0.0, %v453_v17 }
  0x9b   : > { %v505_v18 = vpop.permute.xlu1 %504  ;;  %v548_v41 = vpop.permute.xlu0 %547 }
  0x9c   : > { %v513_v21 = vmul.f32 %v511_v8, %v505_v18  ;;  %v514_v22 = vmul.f32 %v512_v9, %v505_v18  ;;  %v550_v46 = vperm.slane %v548_v41, 0 }
  0x9e   : > { %v515_v24 = vadd.f32 %v513_v21, %v501_v19  ;;  %v516_v25 = vadd.f32 %v514_v22, %v502_v20 }
  0xa0   : > { %v519_v26 = vmul.f32 %v517_v11, %v515_v24  ;;  %v520_v27 = vmul.f32 %v518_v23, %v516_v25 }
  0xa2   : > { %v521_v29 = vmax.f32 %v519_v26, 0.0  ;;  %v522_v30 = vmax.f32 %v520_v27, 0.0 }
  0xa4   : > { %v528_v31 = vmul.f32 %v526_v28, %v521_v29  ;;  %v529_v32 = vmul.f32 %v526_v28, %v522_v30 }
  0xa6   : > { %v531_v33 = vsel %vm530_vm0, %v528_v31, 0.0  ;;  %v538_v34 = vsel %vm530_vm0, %v529_v32, 0.0 }
  0xa7   : > { %v532_v35 = vrot.slane %v531_v33, 4  ;;  %v539_v36 = vrot.slane %v538_v34, 4 }
  0xa9   : > { %v533_v37 = vadd.f32 %v532_v35, %v531_v33  ;;  %v540_v38 = vadd.f32 %v539_v36, %v538_v34 }
  0xab   : > { %v534_v39 = vrot.slane %v533_v37, 2  ;;  %v541_v40 = vrot.slane %v540_v38, 2 }
  0xad   : > { %v535_v42 = vadd.f32 %v534_v39, %v533_v37  ;;  %v542_v43 = vadd.f32 %v541_v40, %v540_v38 }
  0xaf   : > { %v536_v44 = vrot.slane %v535_v42, 1  ;;  %v543_v45 = vrot.slane %v542_v43, 1 }
  0xb1   : > { %v537_v47 = vadd.f32 %v536_v44, %v535_v42  ;;  %v544_v48 = vadd.f32 %v543_v45, %v542_v43 }
  0xb3   : > { %v551_v49 = vadd.f32 %v550_v46, %v537_v47  ;;  %v552_v50 = vadd.f32 %v550_v46, %v544_v48 }
  0xb5   : > { %v715_v51 = vmul.f32 -1.442695, %v551_v49  ;;  %v716_v52 = vmul.f32 -1.442695, %v552_v50 }
  0xb7   : > { %760 = vpow2.f32 %v715_v51 }
  0xb8   : > { %762 = vpow2.f32 %v716_v52 }
  0xbd   : > { %v761_v53 = vpop.eup %760 }
  0xbe   : > { %v763_v54 = vpop.eup %762  ;;  %v559_v55 = vadd.f32 1.0, %v761_v53 }
  0xbf   : > { %v560_v56 = vadd.f32 1.0, %v763_v54 }
  0xc0   : > { %764 = vrcp.f32 %v559_v55  ;;  %vm566_vm3 = vweird.f32 %v559_v55  ;;  %v572_v4 = vand.u32 2147483648, %v559_v55  ;;  %v570_v5 = vand.u32 2147483647, %v559_v55 }
  0xc1   : > { %766 = vrcp.f32 %v560_v56  ;;  %v587_v0 = vand.u32 2147483648, %v560_v56  ;;  %v585_v2 = vand.u32 2147483647, %v560_v56  ;;  %vm581_vm5 = vweird.f32 %v560_v56 }
  0xc2   : > { %v573_v10 = vor.u32 1.1754944e-38, %v572_v4  ;;  %vm571_vm9 = vcmp.eq.f32.partialorder %v570_v5, 8.507059e+37 }
  0xc3   : > { %v588_v7 = vor.u32 1.1754944e-38, %v587_v0  ;;  %vm586_vm7 = vcmp.eq.f32.partialorder %v585_v2, 8.507059e+37 }
  0xc6   : > { %v765_v57 = vpop.eup %764 }
  0xc7   : > { %v767_v58 = vpop.eup %766  ;;  %v562_v59 = vmul.f32 %v765_v57, %v559_v55  ;;  %vm567_vm1 = vweird.f32 %v765_v57 }
  0xc8   : > { %v577_v60 = vmul.f32 %v767_v58, %v560_v56  ;;  %vm582_vm2 = vweird.f32 %v767_v58  ;;  %vm568_vm4 = vmor %vm566_vm3, %vm567_vm1 }
  0xc9   : > { %v563_v61 = vsub.f32 1.0, %v562_v59  ;;  %vm583_vm6 = vmor %vm581_vm5, %vm582_vm2 }
  0xca   : > { %v578_v62 = vsub.f32 1.0, %v577_v60 }
  0xcb   : > { %v564_v63 = vmul.f32 %v765_v57, %v563_v61 }
  0xcc   : > { %v579_v1 = vmul.f32 %v767_v58, %v578_v62 }
  0xcd   : > { %v565_v3 = vadd.f32 %v765_v57, %v564_v63 }
  0xce   : > { %v580_v6 = vadd.f32 %v767_v58, %v579_v1 }
  0xcf   : > { %v569_v8 = vsel %vm568_vm4, %v765_v57, %v565_v3 }
  0xd0   : > { %v584_v9 = vsel %vm583_vm6, %v767_v58, %v580_v6  ;;  %v574_v15 = vsel %vm571_vm9, %v573_v10, %v569_v8 }
  0xd1   : > { %v589_v12 = vsel %vm586_vm7, %v588_v7, %v584_v9 }
  0xd2   : > { %v593_v13 = vrot.slane %v589_v12, 4 }
  0xd4   : > { %v595_v16 = vsel %vm594_vm8, %v574_v15, %v593_v13 }
  0xd5   : > { %v597_v17 = vmul.f32 %v595_v16, %v887_v14 }
  0xd7   : > { %598 = vst [vmem:[%s381_s29] sm:$0xff] %v597_v17 }
  0xd8 PF: > { %s20_s9 = sadd.s32 1, %s790_s9   ;;  %s924_s29 = smov %s786_s30 }
  0xd9   : > { %p17_p5 = scmp.ge.s32.totalorder %s20_s9, 4   ;;  %s925_s30 = smov %s927_s7 }
  0xdb   :  { %19 = sbr.rel (!%p17_p5) target bundleno = 3 (0x3), region = 85 }

</bundles_post_ra>
